<compile_context>
chip_gen: v7x
topology: tpu7x:2x2x1
jax: 0.10.0
libtpu: 0.0.40
codegen_flags: <defaults>
</compile_context>

<pallas_src>
import jax
import jax.numpy as jnp
from jax import lax
from jax.experimental import pallas as pl
from jax.experimental.pallas import tpu as pltpu

LN_EPS = 1e-5


def _patch_merge_kernel(xt_ref, xb_ref, gt_ref, gb_ref, bt_ref, bb_ref,
                        wt_ref, wb_ref, o_ref):
    # xt_ref / xb_ref : (tile_r, Wh, 2C)  top / bottom image row of each 2x2 patch
    # gt/gb, bt/bb    : (1, 2C)           LayerNorm gamma/beta halves (f32, permuted)
    # wt/wb           : (2C, 2C)          reduction weight halves (permuted rows)
    # o_ref           : (tile_r, Wh, 2C)
    tr, wh, c2 = xt_ref.shape
    t = tr * wh

    # Leading-dims-only reshape: (tile_r, Wh, 2C) -> (tile_r*Wh, 2C).
    xt = xt_ref[...].astype(jnp.float32).reshape(t, c2)
    xb = xb_ref[...].astype(jnp.float32).reshape(t, c2)

    # LayerNorm over the full 4C = [top | bottom] channels (stats are
    # permutation-invariant), computed in f32.
    inv_c4 = 1.0 / (2.0 * c2)
    mean = (jnp.sum(xt, axis=-1, keepdims=True)
            + jnp.sum(xb, axis=-1, keepdims=True)) * inv_c4
    ct = xt - mean
    cb = xb - mean
    var = (jnp.sum(ct * ct, axis=-1, keepdims=True)
           + jnp.sum(cb * cb, axis=-1, keepdims=True)) * inv_c4
    rstd = lax.rsqrt(var + LN_EPS)

    yt = ct * rstd * gt_ref[...] + bt_ref[...]
    yb = cb * rstd * gb_ref[...] + bb_ref[...]

    # 4C -> 2C reduction as two 2C -> 2C matmuls, f32 accumulation on the MXU.
    mm_dt = wt_ref.dtype  # == input dtype (bf16-native path when x is bf16)
    acc = jnp.dot(yt.astype(mm_dt), wt_ref[...],
                  preferred_element_type=jnp.float32)
    acc = acc + jnp.dot(yb.astype(mm_dt), wb_ref[...],
                        preferred_element_type=jnp.float32)

    o_ref[...] = acc.reshape(tr, wh, acc.shape[-1]).astype(o_ref.dtype)


def patch_merge(x, gamma, beta, w_red, *, tile_rows=64):
    """PatchMerge forward.

    x      : [B, H, W, C]
    gamma  : [4C]      LayerNorm weight
    beta   : [4C]      LayerNorm bias
    w_red  : [4C, 2C]  reduction weight (= transposed torch Linear weight)
    returns: [B, H//2, W//2, 2C]
    """
    B, H, W, C = x.shape
    assert H % 2 == 0 and W % 2 == 0
    C2, C4 = 2 * C, 4 * C
    Wh = W // 2
    R = B * (H // 2)

    # Free reshape (pure dim split/merge, no HBM copy):
    #   xv[r, 0, w', :] = [x0 | x2]   (image row 2h', cols 2w', 2w'+1)
    #   xv[r, 1, w', :] = [x1 | x3]   (image row 2h'+1)
    xv = x.reshape(R, 2, Wh, C2)

    # Permute params from torch's [x0, x1, x2, x3] order to [x0, x2, x1, x3]
    # and split into top/bottom halves (done once, on the host).
    perm = jnp.concatenate([
        jnp.arange(0, C), jnp.arange(2 * C, 3 * C),
        jnp.arange(C, 2 * C), jnp.arange(3 * C, 4 * C)])
    gamma_p = gamma.reshape(C4)[perm].astype(jnp.float32)
    beta_p = beta.reshape(C4)[perm].astype(jnp.float32)
    w_p = w_red[perm, :].astype(x.dtype)  # MXU operands in the input dtype
    gt, gb = gamma_p[:C2].reshape(1, C2), gamma_p[C2:].reshape(1, C2)
    bt, bb = beta_p[:C2].reshape(1, C2), beta_p[C2:].reshape(1, C2)
    wt, wb = w_p[:C2, :], w_p[C2:, :]

    # Tile over row-pairs; each grid step handles tile_r * W/2 output tokens.
    tile_r = max(1, min(tile_rows, R))
    grid = (pl.cdiv(R, tile_r),)

    # Explicit VMEM budget: double-buffered IO blocks + params + f32 temporaries.
    itemsize = jnp.dtype(x.dtype).itemsize
    in_blk = tile_r * Wh * C2 * itemsize          # one half, one buffer
    out_blk = tile_r * Wh * C2 * itemsize
    par_blk = 2 * C2 * C2 * itemsize + 4 * C2 * 4
    temps = 8 * tile_r * Wh * C2 * 4              # f32 intermediates (generous)
    vmem_bytes = 2 * (2 * in_blk) + 2 * out_blk + 2 * par_blk + temps
    vmem_limit = int(min(max(2 * vmem_bytes + (4 << 20), 16 << 20), 40 << 20))

    out = pl.pallas_call(
        _patch_merge_kernel,
        out_shape=jax.ShapeDtypeStruct((R, Wh, C2), x.dtype),
        grid_spec=pltpu.PrefetchScalarGridSpec(
            num_scalar_prefetch=0,
            grid=grid,
            in_specs=[
                # top / bottom halves: two views into the SAME array xv
                pl.BlockSpec((tile_r, None, Wh, C2), lambda i: (i, 0, 0, 0)),
                pl.BlockSpec((tile_r, None, Wh, C2), lambda i: (i, 1, 0, 0)),
                pl.BlockSpec((1, C2), lambda i: (0, 0)),   # gamma top
                pl.BlockSpec((1, C2), lambda i: (0, 0)),   # gamma bottom
                pl.BlockSpec((1, C2), lambda i: (0, 0)),   # beta top
                pl.BlockSpec((1, C2), lambda i: (0, 0)),   # beta bottom
                pl.BlockSpec((C2, C2), lambda i: (0, 0)),  # W top half
                pl.BlockSpec((C2, C2), lambda i: (0, 0)),  # W bottom half
            ],
            out_specs=pl.BlockSpec((tile_r, Wh, C2), lambda i: (i, 0, 0)),
        ),
        compiler_params=pltpu.CompilerParams(
            dimension_semantics=("parallel",),
            vmem_limit_bytes=vmem_limit,
        ),
    )(xv, xv, gt, gb, bt, bb, wt, wb)

    return out.reshape(B, H // 2, Wh, C2)


def patch_merge_ref(x, gamma, beta, w_red):
    """Pure-JAX reference matching the PyTorch forward."""
    x0 = x[:, 0::2, 0::2, :]
    x1 = x[:, 1::2, 0::2, :]
    x2 = x[:, 0::2, 1::2, :]
    x3 = x[:, 1::2, 1::2, :]
    xc = jnp.concatenate([x0, x1, x2, x3], axis=-1).astype(jnp.float32)
    mean = jnp.mean(xc, axis=-1, keepdims=True)
    var = jnp.mean((xc - mean) ** 2, axis=-1, keepdims=True)
    xn = (xc - mean) / jnp.sqrt(var + LN_EPS)
    y = xn * gamma.astype(jnp.float32) + beta.astype(jnp.float32)
    return jnp.einsum("bhwc,cd->bhwd", y, w_red.astype(jnp.float32)).astype(x.dtype)


if __name__ == "__main__":
    key = jax.random.PRNGKey(0)
    kx, kw, kg, kb = jax.random.split(key, 4)

    # Small shapes consistent with the module (dim = C = 32).
    B, H, W, C = 2, 16, 16, 32
    x = jax.random.normal(kx, (B, H, W, C), dtype=jnp.float32)

    # Non-trivial LN params so the channel permutation is actually exercised.
    gamma = 1.0 + 0.1 * jax.random.normal(kg, (4 * C,), dtype=jnp.float32)
    beta = 0.05 * jax.random.normal(kb, (4 * C,), dtype=jnp.float32)
    # torch Linear weight is (out=2C, in=4C); kernel uses (4C, 2C) = W.T
    w_torch = jax.random.normal(kw, (2 * C, 4 * C), dtype=jnp.float32) * 0.02
    w_red = w_torch.T

    out = patch_merge(x, gamma, beta, w_red)
    jax.block_until_ready(out)

    ref = patch_merge_ref(x, gamma, beta, w_red)
    assert out.shape == (B, H // 2, W // 2, 2 * C)
    assert jnp.allclose(out, ref, atol=1e-4, rtol=1e-4), \
        float(jnp.max(jnp.abs(out - ref)))

    print("KERNEL_OK")
</pallas_src>

<mosaic_0001>
module attributes {stable_mosaic.version = 11 : i64} {
  func.func @_patch_merge_kernel(%arg0: i32, %arg1: memref<16x1x8x64xf32, #tpu.memory_space<vmem>>, %arg2: memref<16x1x8x64xf32, #tpu.memory_space<vmem>>, %arg3: memref<1x64xf32, #tpu.memory_space<vmem>>, %arg4: memref<1x64xf32, #tpu.memory_space<vmem>>, %arg5: memref<1x64xf32, #tpu.memory_space<vmem>>, %arg6: memref<1x64xf32, #tpu.memory_space<vmem>>, %arg7: memref<64x64xf32, #tpu.memory_space<vmem>>, %arg8: memref<64x64xf32, #tpu.memory_space<vmem>>, %arg9: memref<16x8x64xf32, #tpu.memory_space<vmem>>) attributes {dimension_semantics = [#tpu.dimension_semantics<parallel>], iteration_bounds = array<i64: 1>, scalar_prefetch = 0 : i64, scratch_operands = 0 : i64, tpu.core_type = #tpu.core_type<tc>, window_params = [{transform_indices = @transform_0, window_bounds = array<i64: 16, 1, 8, 64>}, {transform_indices = @transform_1, window_bounds = array<i64: 16, 1, 8, 64>}, {pipeline_mode = #tpu.pipeline_mode<synchronous>, transform_indices = @transform_2, window_bounds = array<i64: 1, 64>}, {pipeline_mode = #tpu.pipeline_mode<synchronous>, transform_indices = @transform_3, window_bounds = array<i64: 1, 64>}, {pipeline_mode = #tpu.pipeline_mode<synchronous>, transform_indices = @transform_4, window_bounds = array<i64: 1, 64>}, {pipeline_mode = #tpu.pipeline_mode<synchronous>, transform_indices = @transform_5, window_bounds = array<i64: 1, 64>}, {pipeline_mode = #tpu.pipeline_mode<synchronous>, transform_indices = @transform_6, window_bounds = array<i64: 64, 64>}, {pipeline_mode = #tpu.pipeline_mode<synchronous>, transform_indices = @transform_7, window_bounds = array<i64: 64, 64>}, {transform_indices = @transform_8, window_bounds = array<i64: 16, 8, 64>}]} {
    %c0 = arith.constant 0 : index
    %c0_0 = arith.constant 0 : index
    %c0_1 = arith.constant 0 : index
    %c0_2 = arith.constant 0 : index
    %0 = vector.load %arg1[%c0, %c0_0, %c0_1, %c0_2] : memref<16x1x8x64xf32, #tpu.memory_space<vmem>>, vector<16x1x8x64xf32>
    %1 = vector.shape_cast %0 : vector<16x1x8x64xf32> to vector<16x8x64xf32>
    %2 = vector.shape_cast %1 : vector<16x8x64xf32> to vector<128x64xf32>
    %c0_3 = arith.constant 0 : index
    %c0_4 = arith.constant 0 : index
    %c0_5 = arith.constant 0 : index
    %c0_6 = arith.constant 0 : index
    %3 = vector.load %arg2[%c0_3, %c0_4, %c0_5, %c0_6] : memref<16x1x8x64xf32, #tpu.memory_space<vmem>>, vector<16x1x8x64xf32>
    %4 = vector.shape_cast %3 : vector<16x1x8x64xf32> to vector<16x8x64xf32>
    %5 = vector.shape_cast %4 : vector<16x8x64xf32> to vector<128x64xf32>
    %cst = arith.constant dense<0.000000e+00> : vector<128xf32>
    %6 = vector.multi_reduction <add>, %2, %cst [1] : vector<128x64xf32> to vector<128xf32>
    %7 = vector.shape_cast %6 : vector<128xf32> to vector<128x1xf32>
    %cst_7 = arith.constant dense<0.000000e+00> : vector<128xf32>
    %8 = vector.multi_reduction <add>, %5, %cst_7 [1] : vector<128x64xf32> to vector<128xf32>
    %9 = vector.shape_cast %8 : vector<128xf32> to vector<128x1xf32>
    %10 = arith.addf %7, %9 : vector<128x1xf32>
    %cst_8 = arith.constant 7.812500e-03 : f32
    %11 = vector.broadcast %cst_8 : f32 to vector<128x1xf32>
    %12 = arith.mulf %10, %11 : vector<128x1xf32>
    %13 = vector.broadcast %12 : vector<128x1xf32> to vector<128x64xf32>
    %14 = arith.subf %2, %13 : vector<128x64xf32>
    %15 = vector.broadcast %12 : vector<128x1xf32> to vector<128x64xf32>
    %16 = arith.subf %5, %15 : vector<128x64xf32>
    %17 = arith.mulf %14, %14 : vector<128x64xf32>
    %cst_9 = arith.constant dense<0.000000e+00> : vector<128xf32>
    %18 = vector.multi_reduction <add>, %17, %cst_9 [1] : vector<128x64xf32> to vector<128xf32>
    %19 = vector.shape_cast %18 : vector<128xf32> to vector<128x1xf32>
    %20 = arith.mulf %16, %16 : vector<128x64xf32>
    %cst_10 = arith.constant dense<0.000000e+00> : vector<128xf32>
    %21 = vector.multi_reduction <add>, %20, %cst_10 [1] : vector<128x64xf32> to vector<128xf32>
    %22 = vector.shape_cast %21 : vector<128xf32> to vector<128x1xf32>
    %23 = arith.addf %19, %22 : vector<128x1xf32>
    %cst_11 = arith.constant 7.812500e-03 : f32
    %24 = vector.broadcast %cst_11 : f32 to vector<128x1xf32>
    %25 = arith.mulf %23, %24 : vector<128x1xf32>
    %cst_12 = arith.constant 9.99999974E-6 : f32
    %26 = vector.broadcast %cst_12 : f32 to vector<128x1xf32>
    %27 = arith.addf %25, %26 : vector<128x1xf32>
    %28 = math.rsqrt %27 : vector<128x1xf32>
    %29 = vector.broadcast %28 : vector<128x1xf32> to vector<128x64xf32>
    %30 = arith.mulf %14, %29 : vector<128x64xf32>
    %c0_13 = arith.constant 0 : index
    %c0_14 = arith.constant 0 : index
    %31 = vector.load %arg3[%c0_13, %c0_14] : memref<1x64xf32, #tpu.memory_space<vmem>>, vector<1x64xf32>
    %32 = vector.broadcast %31 : vector<1x64xf32> to vector<128x64xf32>
    %33 = arith.mulf %30, %32 : vector<128x64xf32>
    %c0_15 = arith.constant 0 : index
    %c0_16 = arith.constant 0 : index
    %34 = vector.load %arg5[%c0_15, %c0_16] : memref<1x64xf32, #tpu.memory_space<vmem>>, vector<1x64xf32>
    %35 = vector.broadcast %34 : vector<1x64xf32> to vector<128x64xf32>
    %36 = arith.addf %33, %35 : vector<128x64xf32>
    %37 = vector.broadcast %28 : vector<128x1xf32> to vector<128x64xf32>
    %38 = arith.mulf %16, %37 : vector<128x64xf32>
    %c0_17 = arith.constant 0 : index
    %c0_18 = arith.constant 0 : index
    %39 = vector.load %arg4[%c0_17, %c0_18] : memref<1x64xf32, #tpu.memory_space<vmem>>, vector<1x64xf32>
    %40 = vector.broadcast %39 : vector<1x64xf32> to vector<128x64xf32>
    %41 = arith.mulf %38, %40 : vector<128x64xf32>
    %c0_19 = arith.constant 0 : index
    %c0_20 = arith.constant 0 : index
    %42 = vector.load %arg6[%c0_19, %c0_20] : memref<1x64xf32, #tpu.memory_space<vmem>>, vector<1x64xf32>
    %43 = vector.broadcast %42 : vector<1x64xf32> to vector<128x64xf32>
    %44 = arith.addf %41, %43 : vector<128x64xf32>
    %c0_21 = arith.constant 0 : index
    %c0_22 = arith.constant 0 : index
    %45 = vector.load %arg7[%c0_21, %c0_22] : memref<64x64xf32, #tpu.memory_space<vmem>>, vector<64x64xf32>
    %cst_23 = arith.constant dense<0.000000e+00> : vector<128x64xf32>
    %46 = tpu.matmul %36, %45, %cst_23 {dimension_numbers = #tpu.dot_dimension_numbers<[1], [0], [0], [1], [0, 0, 1, 1], [], []>} : vector<128x64xf32>, vector<64x64xf32>, vector<128x64xf32> -> vector<128x64xf32>
    %c0_24 = arith.constant 0 : index
    %c0_25 = arith.constant 0 : index
    %47 = vector.load %arg8[%c0_24, %c0_25] : memref<64x64xf32, #tpu.memory_space<vmem>>, vector<64x64xf32>
    %cst_26 = arith.constant dense<0.000000e+00> : vector<128x64xf32>
    %48 = tpu.matmul %44, %47, %cst_26 {dimension_numbers = #tpu.dot_dimension_numbers<[1], [0], [0], [1], [0, 0, 1, 1], [], []>} : vector<128x64xf32>, vector<64x64xf32>, vector<128x64xf32> -> vector<128x64xf32>
    %49 = arith.addf %46, %48 : vector<128x64xf32>
    %50 = vector.shape_cast %49 : vector<128x64xf32> to vector<16x8x64xf32>
    %c0_27 = arith.constant 0 : index
    %c0_28 = arith.constant 0 : index
    %c0_29 = arith.constant 0 : index
    %51 = vector.load %arg9[%c0_27, %c0_28, %c0_29] : memref<16x8x64xf32, #tpu.memory_space<vmem>>, vector<16x8x64xf32>
    tpu.vector_store %arg9[%c0_27, %c0_28, %c0_29], %50 {strides = array<i32>} : memref<16x8x64xf32, #tpu.memory_space<vmem>>, vector<16x8x64xf32>,
    return
  }
  func.func @transform_0(%arg0: i32) -> (i32, i32, i32, i32) {
    %c0_i32 = arith.constant 0 : i32
    %c0_i32_0 = arith.constant 0 : i32
    %c0_i32_1 = arith.constant 0 : i32
    %c0_i32_2 = arith.constant 0 : i32
    return %arg0, %c0_i32, %c0_i32_0, %c0_i32_1 : i32, i32, i32, i32
  }
  func.func @transform_1(%arg0: i32) -> (i32, i32, i32, i32) {
    %c1_i32 = arith.constant 1 : i32
    %c0_i32 = arith.constant 0 : i32
    %c0_i32_0 = arith.constant 0 : i32
    %c0_i32_1 = arith.constant 0 : i32
    return %arg0, %c1_i32, %c0_i32, %c0_i32_0 : i32, i32, i32, i32
  }
  func.func @transform_2(%arg0: i32) -> (i32, i32) {
    %c0_i32 = arith.constant 0 : i32
    %c0_i32_0 = arith.constant 0 : i32
    %c0_i32_1 = arith.constant 0 : i32
    return %c0_i32, %c0_i32_0 : i32, i32
  }
  func.func @transform_3(%arg0: i32) -> (i32, i32) {
    %c0_i32 = arith.constant 0 : i32
    %c0_i32_0 = arith.constant 0 : i32
    %c0_i32_1 = arith.constant 0 : i32
    return %c0_i32, %c0_i32_0 : i32, i32
  }
  func.func @transform_4(%arg0: i32) -> (i32, i32) {
    %c0_i32 = arith.constant 0 : i32
    %c0_i32_0 = arith.constant 0 : i32
    %c0_i32_1 = arith.constant 0 : i32
    return %c0_i32, %c0_i32_0 : i32, i32
  }
  func.func @transform_5(%arg0: i32) -> (i32, i32) {
    %c0_i32 = arith.constant 0 : i32
    %c0_i32_0 = arith.constant 0 : i32
    %c0_i32_1 = arith.constant 0 : i32
    return %c0_i32, %c0_i32_0 : i32, i32
  }
  func.func @transform_6(%arg0: i32) -> (i32, i32) {
    %c0_i32 = arith.constant 0 : i32
    %c0_i32_0 = arith.constant 0 : i32
    %c0_i32_1 = arith.constant 0 : i32
    return %c0_i32, %c0_i32_0 : i32, i32
  }
  func.func @transform_7(%arg0: i32) -> (i32, i32) {
    %c0_i32 = arith.constant 0 : i32
    %c0_i32_0 = arith.constant 0 : i32
    %c0_i32_1 = arith.constant 0 : i32
    return %c0_i32, %c0_i32_0 : i32, i32
  }
  func.func @transform_8(%arg0: i32) -> (i32, i32, i32) {
    %c0_i32 = arith.constant 0 : i32
    %c0_i32_0 = arith.constant 0 : i32
    %c0_i32_1 = arith.constant 0 : i32
    return %arg0, %c0_i32, %c0_i32_0 : i32, i32, i32
  }
}

</mosaic_0001>

<bundles_post_ra>
// kernel: tpu_custom_call.1
= control target key start
LH: loop header
LB: loop body
LE: loop exit
PB: predicated region body
PF: predicated region fallthrough
CT: control target
= control target key end

     0   :  { %13 = vsyncpa [#allocation3], 0  ;;  %s2038_s0 = inlined_call_operand.hbm [shape: f32[16,2,8,64], index: 0, kind: input, shape index: {}]   ;;  %s2039_s1 = inlined_call_operand.hbm [shape: f32[16,2,8,64], index: 1, kind: input, shape index: {}]   ;;  %s2040_s2 = inlined_call_operand.vmem [shape: f32[1,64], index: 2, kind: input, shape index: {}]   ;;  %s2041_s3 = inlined_call_operand.vmem [shape: f32[1,64], index: 3, kind: input, shape index: {}]   ;;  %s2042_s4 = inlined_call_operand.vmem [shape: f32[1,64], index: 4, kind: input, shape index: {}]   ;;  %s2043_s5 = inlined_call_operand.vmem [shape: f32[1,64], index: 5, kind: input, shape index: {}]   ;;  %s2044_s6 = inlined_call_operand.hbm [shape: f32[64,64], index: 6, kind: input, shape index: {}]   ;;  %s2045_s7 = inlined_call_operand.hbm [shape: f32[64,64], index: 7, kind: input, shape index: {}]   ;;  %s2046_s8 = inlined_call_operand.hbm [shape: f32[16,8,64], index: 8, kind: output, shape index: {}]  }
   0x1   :  { %14 = vsyncpa [#allocation6], 0 }
   0x2   :  { %15 = vsyncpa [#allocation9], 0 }
   0x3   :  { %16 = vsyncpa [#allocation4], 0  ;;  %s1461_s29 = scalar_lea.hbm %s2039_s1, 128  ;;  %s1405_s30 = smov [#allocation5]  }
   0x4   :  { %s35_s9 = sshll.u32 %s1405_s30, 4  ;;  %s1406_s10 = smov [#allocation2]   ;;  %s36_s9 = int_to_ptr.vmem [resolvable:$true] %s35_s9 }
   0x5   :  { %s22_s11 = sshll.u32 %s1406_s10, 4  ;;  %s1308_s14 = scalar_lea.hbm %s2039_s1, 2176  ;;  %s1463_s11 = int_to_ptr.vmem [resolvable:$true] %s22_s11 }
   0x6   :  { %p1285_p0 = scmp.ne.s32.totalorder %s1461_s29, %s1308_s14  ;;  %s1286_s17 = scalar_lea.hbm %s2039_s1, 4096 }
   0x7   :  { %p1287_p1 = scmp.lt.u32.totalorder %s1461_s29, %s2039_s1  ;;  %p1288_p2 = scmp.lt.u32.totalorder %s1286_s17, %s1308_s14 }
   0x8   :  { %p1290_p4 = scmp.lt.u32.totalorder %s1308_s14, %s1461_s29 }
   0x9   :  { %p1289_p3 = por %p1288_p2, %p1287_p1 }
   0xb   :  { %p1291_p5 = por %p1290_p4, %p1289_p3 }
   0xd   :  { %p1292_p6 = pnand %p1291_p5, %p1285_p0 }
   0xf   :  { %1295 = shalt.err (!%p1292_p6)
}
  0x10   :  { %s1296_s20 = scalar_lea.vmem %s36_s9, 2048  ;;  %p1301_p8 = scmp.lt.s32.totalorder %s36_s9, %s36_s9 }
  0x11   :  { %p1297_p7 = scmp.ne.s32.totalorder %s36_s9, %s1296_s20  ;;  %p1302_p9 = scmp.lt.s32.totalorder %s1296_s20, %s1296_s20 }
  0x13   :  { %p1303_p10 = por %p1302_p9, %p1301_p8 }
  0x15   :  { %p1304_p11 = pnand %p1303_p10, %p1297_p7 }
  0x17   :  { %1307 = shalt.err (!%p1304_p11)
}
  0x18   :  { %s1407_s21 = smov 256   ;;  %s1408_s22 = smov 128  }
  0x19   :  { %s1409_s23 = smov 8   ;;  %s1309_s25 = scalar_lea.hbm %s2038_s0, 2048 }
  0x1a   :  { %41 = dma.hbm_to_vmem [thread:$0]  %s1461_s29, 2048, %s36_s9, [#allocation6], %s1407_s21, %s1408_s22, %s1409_s23  }
  0x1b   :  { %p1310_p12 = scmp.ne.s32.totalorder %s2038_s0, %s1309_s25  ;;  %s1311_s10 = scalar_lea.hbm %s2038_s0, 4096 }
  0x1c   :  { %p1312_p13 = scmp.lt.u32.totalorder %s1311_s10, %s1309_s25  ;;  %p1313_p0 = scmp.lt.u32.totalorder %s1309_s25, %s2038_s0 }
  0x1e   :  { %p1314_p1 = por %p1313_p0, %p1312_p13 }
  0x20   :  { %p1315_p2 = pnand %p1314_p1, %p1310_p12 }
  0x22   :  { %1318 = shalt.err (!%p1315_p2)
}
  0x23   :  { %s1319_s29 = scalar_lea.vmem %s1463_s11, 2048  ;;  %p1324_p4 = scmp.lt.s32.totalorder %s1463_s11, %s1463_s11 }
  0x24   :  { %p1320_p3 = scmp.ne.s32.totalorder %s1463_s11, %s1319_s29  ;;  %p1325_p5 = scmp.lt.s32.totalorder %s1319_s29, %s1319_s29 }
  0x26   :  { %p1326_p6 = por %p1325_p5, %p1324_p4 }
  0x28   :  { %p1327_p7 = pnand %p1326_p6, %p1320_p3 }
  0x2a   :  { %1330 = shalt.err (!%p1327_p7)
}
  0x2b   :  { %28 = dma.hbm_to_vmem [thread:$0]  %s2038_s0, 2048, %s1463_s11, [#allocation3], %s1407_s21, %s1408_s22, %s1409_s23  }
  0x2c   :  { %s1410_s15 = smov [#allocation7]   ;;  %s1411_s17 = smov [#allocation8]  }
  0x2d   :  { %s55_s16 = sshll.u32 %s1410_s15, 4  ;;  %s67_s18 = sshll.u32 %s1411_s17, 4  ;;  %s56_s16 = int_to_ptr.vmem [resolvable:$true] %s55_s16  ;;  %s1502_s18 = int_to_ptr.vmem [resolvable:$true] %s67_s18 }
  0x2e   :  { %s1331_s1 = scalar_lea.hbm %s2044_s6, 1024 }
  0x2f   :  { %p1332_p8 = scmp.ne.s32.totalorder %s2044_s6, %s1331_s1  ;;  %p1335_p9 = scmp.lt.u32.totalorder %s1331_s1, %s2044_s6 }
  0x31   :  { %p1337_p10 = pnand %p1335_p9, %p1332_p8 }
  0x33   :  { %1340 = shalt.err (!%p1337_p10)
}
  0x34   :  { %s1341_s0 = scalar_lea.vmem %s56_s16, 1024  ;;  %p1346_p12 = scmp.lt.s32.totalorder %s56_s16, %s56_s16 }
  0x35   :  { %p1342_p11 = scmp.ne.s32.totalorder %s56_s16, %s1341_s0  ;;  %p1347_p13 = scmp.lt.s32.totalorder %s1341_s0, %s1341_s0 }
  0x37   :  { %p1348_p0 = por %p1347_p13, %p1346_p12 }
  0x39   :  { %p1349_p1 = pnand %p1348_p0, %p1342_p11 }
  0x3b   :  { %1352 = shalt.err (!%p1349_p1)
}
  0x3c   :  { %61 = dma.hbm_to_vmem [thread:$0]  %s2044_s6, 1024, %s56_s16, [#allocation6], %s1408_s22, %s1408_s22, %s1409_s23  }
  0x3d   :  { %s1353_s10 = scalar_lea.hbm %s2045_s7, 1024 }
  0x3e   :  { %p1354_p2 = scmp.ne.s32.totalorder %s2045_s7, %s1353_s10  ;;  %p1357_p3 = scmp.lt.u32.totalorder %s1353_s10, %s2045_s7 }
  0x40   :  { %p1359_p4 = pnand %p1357_p3, %p1354_p2 }
  0x42   :  { %1362 = shalt.err (!%p1359_p4)
}
  0x43   :  { %s1363_s14 = scalar_lea.vmem %s1502_s18, 1024  ;;  %p1368_p6 = scmp.lt.s32.totalorder %s1502_s18, %s1502_s18 }
  0x44   :  { %p1364_p5 = scmp.ne.s32.totalorder %s1502_s18, %s1363_s14  ;;  %p1369_p7 = scmp.lt.s32.totalorder %s1363_s14, %s1363_s14 }
  0x46   :  { %p1370_p8 = por %p1369_p7, %p1368_p6 }
  0x48   :  { %p1371_p9 = pnand %p1370_p8, %p1364_p5 }
  0x4a   :  { %1374 = shalt.err (!%p1371_p9)
}
  0x4b   :  { %73 = dma.hbm_to_vmem [thread:$0]  %s2045_s7, 1024, %s1502_s18, [#allocation9], %s1408_s22, %s1408_s22, %s1409_s23  }
  0x4c   :  { %1397 = dma.done.wait [#allocation3], 2048  }
  0x4d   :  { %1398 = vsyncadd [#allocation3], 4294965248 }
  0x4e   :  { %1399 = dma.done.wait [#allocation6], 3072  }
  0x4f   :  { %1400 = vsyncadd [#allocation6], 4294964224 }
  0x50   :  { %1401 = dma.done.wait [#allocation9], 1024  }
  0x51   :  { %1402 = vsyncadd [#allocation9], 4294966272  ;;  %vm118_vm0 = vcmask 523264   ;;  %v1539_v0 = vld [vmem:[#allocation2 + $0x8] sm:$0xff]  ;;  %v1541_v1 = vld [vmem:[#allocation2] sm:$0xff] }
  0x52   :  { %v1543_v2 = vld [vmem:[#allocation5 + $0x8] sm:$0xff]  ;;  %v122_v3 = vsel %vm118_vm0, %v1539_v0, 0.0  ;;  %v119_v4 = vsel %vm118_vm0, %v1541_v1, 0.0  ;;  %v1549_v5 = vld [vmem:[#allocation5] sm:$0xff]  ;;  %v1555_v8 = vld [vmem:[#allocation5 + $0x10] sm:$0xff] }
  0x53   :  { %123 = vadd.xlane.f32.xlu1 %v122_v3  ;;  %120 = vadd.xlane.f32.xlu0 %v119_v4  ;;  %v170_v6 = vsel %vm118_vm0, %v1543_v2, 0.0  ;;  %v167_v7 = vsel %vm118_vm0, %v1549_v5, 0.0  ;;  %v1557_v9 = vld [vmem:[#allocation2 + $0x10] sm:$0xff]  ;;  %v173_v10 = vsel %vm118_vm0, %v1555_v8, 0.0  ;;  %v1563_v12 = vld [vmem:[#allocation5 + $0x18] sm:$0xff]  ;;  %v1571_v16 = vld [vmem:[#allocation5 + $0x20] sm:$0xff] }
  0x54   :  { %v125_v11 = vsel %vm118_vm0, %v1557_v9, 0.0  ;;  %v1565_v13 = vld [vmem:[#allocation2 + $0x18] sm:$0xff]  ;;  %v176_v14 = vsel %vm118_vm0, %v1563_v12, 0.0  ;;  %v1573_v17 = vld [vmem:[#allocation2 + $0x20] sm:$0xff]  ;;  %v179_v18 = vsel %vm118_vm0, %v1571_v16, 0.0  ;;  %v1579_v20 = vld [vmem:[#allocation5 + $0x28] sm:$0xff] }
  0x55   :  { %v128_v15 = vsel %vm118_vm0, %v1565_v13, 0.0  ;;  %v131_v19 = vsel %vm118_vm0, %v1573_v17, 0.0  ;;  %v1581_v21 = vld [vmem:[#allocation2 + $0x28] sm:$0xff]  ;;  %v182_v22 = vsel %vm118_vm0, %v1579_v20, 0.0  ;;  %v1587_v24 = vld [vmem:[#allocation5 + $0x30] sm:$0xff]  ;;  %v1595_v28 = vld [vmem:[#allocation5 + $0x38] sm:$0xff] }
  0x56   :  { %v134_v23 = vsel %vm118_vm0, %v1581_v21, 0.0  ;;  %v1589_v25 = vld [vmem:[#allocation2 + $0x30] sm:$0xff]  ;;  %v185_v26 = vsel %vm118_vm0, %v1587_v24, 0.0  ;;  %v1597_v29 = vld [vmem:[#allocation2 + $0x38] sm:$0xff]  ;;  %v188_v30 = vsel %vm118_vm0, %v1595_v28, 0.0  ;;  %v1603_v32 = vld [vmem:[#allocation5 + $0x40] sm:$0xff] }
  0x57   :  { %171 = vadd.xlane.f32.xlu1 %v170_v6  ;;  %168 = vadd.xlane.f32.xlu0 %v167_v7  ;;  %v137_v27 = vsel %vm118_vm0, %v1589_v25, 0.0  ;;  %v140_v31 = vsel %vm118_vm0, %v1597_v29, 0.0  ;;  %v1605_v33 = vld [vmem:[#allocation2 + $0x40] sm:$0xff]  ;;  %v191_v34 = vsel %vm118_vm0, %v1603_v32, 0.0  ;;  %v1611_v36 = vld [vmem:[#allocation5 + $0x48] sm:$0xff]  ;;  %v1619_v40 = vld [vmem:[#allocation5 + $0x50] sm:$0xff] }
  0x58   :  { %v143_v35 = vsel %vm118_vm0, %v1605_v33, 0.0  ;;  %v1613_v37 = vld [vmem:[#allocation2 + $0x48] sm:$0xff]  ;;  %v194_v38 = vsel %vm118_vm0, %v1611_v36, 0.0  ;;  %v1621_v41 = vld [vmem:[#allocation2 + $0x50] sm:$0xff]  ;;  %v197_v42 = vsel %vm118_vm0, %v1619_v40, 0.0  ;;  %v1627_v44 = vld [vmem:[#allocation5 + $0x58] sm:$0xff] }
  0x59   :  { %v146_v39 = vsel %vm118_vm0, %v1613_v37, 0.0  ;;  %v149_v43 = vsel %vm118_vm0, %v1621_v41, 0.0  ;;  %v1629_v45 = vld [vmem:[#allocation2 + $0x58] sm:$0xff]  ;;  %v200_v46 = vsel %vm118_vm0, %v1627_v44, 0.0  ;;  %v1635_v48 = vld [vmem:[#allocation5 + $0x60] sm:$0xff]  ;;  %v1643_v52 = vld [vmem:[#allocation5 + $0x68] sm:$0xff] }
  0x5a   :  { %v152_v47 = vsel %vm118_vm0, %v1629_v45, 0.0  ;;  %v1637_v49 = vld [vmem:[#allocation2 + $0x60] sm:$0xff]  ;;  %v203_v50 = vsel %vm118_vm0, %v1635_v48, 0.0  ;;  %v1645_v53 = vld [vmem:[#allocation2 + $0x68] sm:$0xff]  ;;  %v206_v54 = vsel %vm118_vm0, %v1643_v52, 0.0  ;;  %v1651_v56 = vld [vmem:[#allocation5 + $0x70] sm:$0xff] }
  0x5b   :  { %174 = vadd.xlane.f32.xlu1 %v173_v10  ;;  %126 = vadd.xlane.f32.xlu0 %v125_v11  ;;  %v155_v51 = vsel %vm118_vm0, %v1637_v49, 0.0  ;;  %v158_v55 = vsel %vm118_vm0, %v1645_v53, 0.0  ;;  %v1653_v57 = vld [vmem:[#allocation2 + $0x70] sm:$0xff]  ;;  %v209_v58 = vsel %vm118_vm0, %v1651_v56, 0.0  ;;  %v1659_v60 = vld [vmem:[#allocation5 + $0x78] sm:$0xff] }
  0x5c   :  { %v161_v59 = vsel %vm118_vm0, %v1653_v57, 0.0  ;;  %v1661_v61 = vld [vmem:[#allocation2 + $0x78] sm:$0xff]  ;;  %v212_v62 = vsel %vm118_vm0, %v1659_v60, 0.0 }
  0x5d   :  { %v164_v63 = vsel %vm118_vm0, %v1661_v61, 0.0 }
  0x5f   :  { %177 = vadd.xlane.f32.xlu1 %v176_v14  ;;  %129 = vadd.xlane.f32.xlu0 %v128_v15 }
  0x63   :  { %180 = vadd.xlane.f32.xlu1 %v179_v18  ;;  %132 = vadd.xlane.f32.xlu0 %v131_v19 }
  0x67   :  { %183 = vadd.xlane.f32.xlu1 %v182_v22  ;;  %135 = vadd.xlane.f32.xlu0 %v134_v23 }
  0x6b   :  { %186 = vadd.xlane.f32.xlu1 %v185_v26  ;;  %138 = vadd.xlane.f32.xlu0 %v137_v27 }
  0x6f   :  { %189 = vadd.xlane.f32.xlu1 %v188_v30  ;;  %141 = vadd.xlane.f32.xlu0 %v140_v31 }
  0x73   :  { %192 = vadd.xlane.f32.xlu1 %v191_v34  ;;  %144 = vadd.xlane.f32.xlu0 %v143_v35 }
  0x77   :  { %195 = vadd.xlane.f32.xlu1 %v194_v38  ;;  %147 = vadd.xlane.f32.xlu0 %v146_v39 }
  0x7b   :  { %198 = vadd.xlane.f32.xlu1 %v197_v42  ;;  %150 = vadd.xlane.f32.xlu0 %v149_v43 }
  0x7f   :  { %201 = vadd.xlane.f32.xlu1 %v200_v46  ;;  %153 = vadd.xlane.f32.xlu0 %v152_v47 }
  0x83   :  { %204 = vadd.xlane.f32.xlu1 %v203_v50  ;;  %156 = vadd.xlane.f32.xlu0 %v155_v51 }
  0x87   :  { %207 = vadd.xlane.f32.xlu1 %v206_v54  ;;  %159 = vadd.xlane.f32.xlu0 %v158_v55 }
  0x8b   :  { %210 = vadd.xlane.f32.xlu1 %v209_v58  ;;  %162 = vadd.xlane.f32.xlu0 %v161_v59 }
  0x8f   :  { %213 = vadd.xlane.f32.xlu1 %v212_v62  ;;  %165 = vadd.xlane.f32.xlu0 %v164_v63 }
  0xe0   :  { %v124_v3 = vpop.xlane.xlu1 %123  ;;  %v121_v4 = vpop.xlane.xlu0 %120 }
  0xe4   :  { %v172_v6 = vpop.xlane.xlu1 %171  ;;  %v169_v7 = vpop.xlane.xlu0 %168 }
  0xe5   :  { %v216_v10 = vadd.f32 %v172_v6, %v124_v3  ;;  %v215_v11 = vadd.f32 %v169_v7, %v121_v4 }
  0xe7   :  { %v232_v14 = vmul.f32 0.0078125, %v216_v10  ;;  %v231_v15 = vmul.f32 0.0078125, %v215_v11 }
  0xe8   :  { %v175_v18 = vpop.xlane.xlu1 %174  ;;  %v127_v19 = vpop.xlane.xlu0 %126 }
  0xe9   :  { %v1668_v22 = vsub.f32 %v1539_v0, %v232_v14  ;;  %v1671_v23 = vsub.f32 %v1543_v2, %v232_v14  ;;  %v1674_v26 = vsub.f32 %v1541_v1, %v231_v15  ;;  %v1677_v27 = vsub.f32 %v1549_v5, %v231_v15 }
  0xea   :  { %v217_v30 = vadd.f32 %v175_v18, %v127_v19 }
  0xeb   :  { %v343_v31 = vmul.f32 %v1677_v27, %v1677_v27  ;;  %v279_v34 = vmul.f32 %v1674_v26, %v1674_v26  ;;  %v344_v2 = vmul.f32 %v1671_v23, %v1671_v23  ;;  %v280_v5 = vmul.f32 %v1668_v22, %v1668_v22 }
  0xec   :  { %v233_v35 = vmul.f32 0.0078125, %v217_v30  ;;  %v178_v38 = vpop.xlane.xlu1 %177  ;;  %v130_v0 = vpop.xlane.xlu0 %129 }
  0xed   :  { %v359_v39 = vsel %vm118_vm0, %v343_v31, 0.0  ;;  %v295_v1 = vsel %vm118_vm0, %v279_v34, 0.0  ;;  %v218_v42 = vadd.f32 %v178_v38, %v130_v0  ;;  %v362_v50 = vsel %vm118_vm0, %v344_v2, 0.0 }
  0xee   :  { %v1690_v43 = vsub.f32 %v1557_v9, %v233_v35  ;;  %v1693_v46 = vsub.f32 %v1555_v8, %v233_v35  ;;  %360 = vadd.xlane.f32.xlu1 %v359_v39  ;;  %296 = vadd.xlane.f32.xlu0 %v295_v1  ;;  %v298_v8 = vsel %vm118_vm0, %v280_v5, 0.0 }
  0xef   :  { %v234_v47 = vmul.f32 0.0078125, %v218_v42 }
  0xf0   :  { %v181_v51 = vpop.xlane.xlu1 %180  ;;  %v133_v54 = vpop.xlane.xlu0 %132  ;;  %v345_v55 = vmul.f32 %v1693_v46, %v1693_v46  ;;  %v281_v58 = vmul.f32 %v1690_v43, %v1690_v43 }
  0xf1   :  { %v1701_v59 = vsub.f32 %v1565_v13, %v234_v47  ;;  %v1704_v9 = vsub.f32 %v1563_v12, %v234_v47  ;;  %v219_v62 = vadd.f32 %v181_v51, %v133_v54 }
  0xf2   :  { %363 = vadd.xlane.f32.xlu1 %v362_v50  ;;  %299 = vadd.xlane.f32.xlu0 %v298_v8  ;;  %v365_v63 = vsel %vm118_vm0, %v345_v55, 0.0  ;;  %v301_v4 = vsel %vm118_vm0, %v281_v58, 0.0 }
  0xf3   :  { %v235_v3 = vmul.f32 0.0078125, %v219_v62  ;;  %v346_v6 = vmul.f32 %v1704_v9, %v1704_v9  ;;  %v282_v13 = vmul.f32 %v1701_v59, %v1701_v59 }
  0xf4   :  { %v184_v7 = vpop.xlane.xlu1 %183  ;;  %v136_v10 = vpop.xlane.xlu0 %135 }
  0xf5   :  { %v1714_v12 = vsub.f32 %v1573_v17, %v235_v3  ;;  %v1717_v11 = vsub.f32 %v1571_v16, %v235_v3  ;;  %v220_v14 = vadd.f32 %v184_v7, %v136_v10  ;;  %v368_v15 = vsel %vm118_vm0, %v346_v6, 0.0 }
  0xf6   :  { %366 = vadd.xlane.f32.xlu1 %v365_v63  ;;  %302 = vadd.xlane.f32.xlu0 %v301_v4  ;;  %v304_v19 = vsel %vm118_vm0, %v282_v13, 0.0 }
  0xf7   :  { %v236_v18 = vmul.f32 0.0078125, %v220_v14  ;;  %v347_v30 = vmul.f32 %v1717_v11, %v1717_v11  ;;  %v283_v31 = vmul.f32 %v1714_v12, %v1714_v12 }
  0xf8   :  { %v187_v34 = vpop.xlane.xlu1 %186  ;;  %v139_v17 = vpop.xlane.xlu0 %138 }
  0xf9   :  { %v1726_v35 = vsub.f32 %v1581_v21, %v236_v18  ;;  %v1729_v16 = vsub.f32 %v1579_v20, %v236_v18  ;;  %v221_v38 = vadd.f32 %v187_v34, %v139_v17  ;;  %v371_v0 = vsel %vm118_vm0, %v347_v30, 0.0  ;;  %v604_v30 = vld [vmem:[#allocation8 + $0x8] sm:$0xff] }
  0xfa   :  { %369 = vadd.xlane.f32.xlu1 %v368_v15  ;;  %305 = vadd.xlane.f32.xlu0 %v304_v19  ;;  %v307_v39 = vsel %vm118_vm0, %v283_v31, 0.0  ;;  %v603_v19 = vld [vmem:[#allocation8] sm:$0xff] }
  0xfb   :  { %v237_v2 = vmul.f32 0.0078125, %v221_v38  ;;  %v348_v1 = vmul.f32 %v1729_v16, %v1729_v16  ;;  %v284_v42 = vmul.f32 %v1726_v35, %v1726_v35  ;;  %v595_v31 = vld [vmem:[#allocation7] sm:$0xff]  ;;  %v1196_v38 = vpack.c.bf16 %v604_v30, %v603_v19 }
  0xfc   :  { %v190_v5 = vpop.xlane.xlu1 %189  ;;  %v142_v21 = vpop.xlane.xlu0 %141  ;;  %v599_v19 = vld [vmem:[#allocation7 + $0x20] sm:$0xff] }
  0xfd   :  { %v1738_v47 = vsub.f32 %v1589_v25, %v237_v2  ;;  %v1741_v20 = vsub.f32 %v1587_v24, %v237_v2  ;;  %v222_v50 = vadd.f32 %v190_v5, %v142_v21  ;;  %v374_v51 = vsel %vm118_vm0, %v348_v1, 0.0  ;;  %1197 = vmatprep.subr.bf16.mxu1 %v1196_v38 }
  0xfe   :  { %372 = vadd.xlane.f32.xlu1 %v371_v0  ;;  %308 = vadd.xlane.f32.xlu0 %v307_v39  ;;  %v310_v55 = vsel %vm118_vm0, %v284_v42, 0.0  ;;  %v596_v0 = vld [vmem:[#allocation7 + $0x8] sm:$0xff] }
  0xff   :  { %v238_v54 = vmul.f32 0.0078125, %v222_v50  ;;  %v349_v58 = vmul.f32 %v1741_v20, %v1741_v20  ;;  %v285_v8 = vmul.f32 %v1738_v47, %v1738_v47  ;;  %v1212_v39 = vpack.c.bf16 %v596_v0, %v595_v31  ;;  %1199 = vmatpush3.bf16.msra.mxu1 %v1196_v38 }
 0x100   :  { %v193_v62 = vpop.xlane.xlu1 %192  ;;  %v145_v25 = vpop.xlane.xlu0 %144 }
 0x101   :  { %v1750_v63 = vsub.f32 %v1597_v29, %v238_v54  ;;  %v1753_v24 = vsub.f32 %v1595_v28, %v238_v54  ;;  %v223_v3 = vadd.f32 %v193_v62, %v145_v25  ;;  %v377_v4 = vsel %vm118_vm0, %v349_v58, 0.0  ;;  %1213 = vmatprep.subr.bf16.mxu0 %v1212_v39  ;;  %v606_v54 = vld [vmem:[#allocation8 + $0x18] sm:$0xff] }
 0x102   :  { %375 = vadd.xlane.f32.xlu1 %v374_v51  ;;  %311 = vadd.xlane.f32.xlu0 %v310_v55  ;;  %v313_v13 = vsel %vm118_vm0, %v285_v8, 0.0  ;;  %v605_v51 = vld [vmem:[#allocation8 + $0x10] sm:$0xff]  ;;  %v598_v25 = vld [vmem:[#allocation7 + $0x18] sm:$0xff] }
 0x103   :  { %v239_v6 = vmul.f32 0.0078125, %v223_v3  ;;  %v350_v7 = vmul.f32 %v1753_v24, %v1753_v24  ;;  %v286_v10 = vmul.f32 %v1750_v63, %v1750_v63  ;;  %v597_v55 = vld [vmem:[#allocation7 + $0x10] sm:$0xff]  ;;  %v1200_v62 = vpack.c.bf16 %v606_v54, %v605_v51  ;;  %1215 = vmatpush3.bf16.msra.mxu0 %v1212_v39 }
 0x104   :  { %v196_v14 = vpop.xlane.xlu1 %195  ;;  %v148_v29 = vpop.xlane.xlu0 %147  ;;  %v601_v51 = vld [vmem:[#allocation7 + $0x30] sm:$0xff] }
 0x105   :  { %v1762_v15 = vsub.f32 %v1605_v33, %v239_v6  ;;  %v1765_v28 = vsub.f32 %v1603_v32, %v239_v6  ;;  %v224_v18 = vadd.f32 %v196_v14, %v148_v29  ;;  %v380_v34 = vsel %vm118_vm0, %v350_v7, 0.0  ;;  %1201 = vmatprep.subr.bf16.mxu1 %v1200_v62  ;;  %v607_v29 = vld [vmem:[#allocation8 + $0x20] sm:$0xff] }
 0x106   :  { %378 = vadd.xlane.f32.xlu1 %v377_v4  ;;  %314 = vadd.xlane.f32.xlu0 %v313_v13  ;;  %v316_v17 = vsel %vm118_vm0, %v286_v10, 0.0  ;;  %v1216_v4 = vpack.c.bf16 %v598_v25, %v597_v55 }
 0x107   :  { %v240_v2 = vmul.f32 0.0078125, %v224_v18  ;;  %v351_v33 = vmul.f32 %v1765_v28, %v1765_v28  ;;  %v287_v32 = vmul.f32 %v1762_v15, %v1762_v15  ;;  %1203 = vmatpush3.bf16.msra.mxu1 %v1200_v62  ;;  %v608_v18 = vld [vmem:[#allocation8 + $0x28] sm:$0xff] }
 0x108   :  { %v199_v1 = vpop.xlane.xlu1 %198  ;;  %v151_v42 = vpop.xlane.xlu0 %150  ;;  %1217 = vmatprep.subr.bf16.mxu0 %v1216_v4 }
 0x109   :  { %v1774_v5 = vsub.f32 %v1613_v37, %v240_v2  ;;  %v1777_v21 = vsub.f32 %v1611_v36, %v240_v2  ;;  %v225_v50 = vadd.f32 %v199_v1, %v151_v42  ;;  %v383_v58 = vsel %vm118_vm0, %v351_v33, 0.0  ;;  %1219 = vmatpush3.bf16.msra.mxu0 %v1216_v4  ;;  %v609_v42 = vld [vmem:[#allocation8 + $0x30] sm:$0xff] }
 0x10a   :  { %381 = vadd.xlane.f32.xlu1 %v380_v34  ;;  %317 = vadd.xlane.f32.xlu0 %v316_v17  ;;  %v319_v8 = vsel %vm118_vm0, %v287_v32, 0.0  ;;  %v1204_v34 = vpack.c.bf16 %v608_v18, %v607_v29  ;;  %v600_v17 = vld [vmem:[#allocation7 + $0x28] sm:$0xff] }
 0x10b   :  { %v241_v3 = vmul.f32 0.0078125, %v225_v50  ;;  %v352_v37 = vmul.f32 %v1777_v21, %v1777_v21  ;;  %v288_v36 = vmul.f32 %v1774_v5, %v1774_v5  ;;  %v1220_v0 = vpack.c.bf16 %v600_v17, %v599_v19  ;;  %v610_v50 = vld [vmem:[#allocation8 + $0x38] sm:$0xff] }
 0x10c   :  { %v202_v6 = vpop.xlane.xlu1 %201  ;;  %v154_v13 = vpop.xlane.xlu0 %153  ;;  %1205 = vmatprep.subr.bf16.mxu1 %v1204_v34 }
 0x10d   :  { %v1786_v7 = vsub.f32 %v1621_v41, %v241_v3  ;;  %v1789_v10 = vsub.f32 %v1619_v40, %v241_v3  ;;  %v226_v14 = vadd.f32 %v202_v6, %v154_v13  ;;  %v386_v30 = vsel %vm118_vm0, %v352_v37, 0.0  ;;  %1221 = vmatprep.subr.bf16.mxu0 %v1220_v0  ;;  %1207 = vmatpush3.bf16.msra.mxu1 %v1204_v34 }
 0x10e   :  { %384 = vadd.xlane.f32.xlu1 %v383_v58  ;;  %320 = vadd.xlane.f32.xlu0 %v319_v8  ;;  %v322_v31 = vsel %vm118_vm0, %v288_v36, 0.0  ;;  %v1208_v58 = vpack.c.bf16 %v610_v50, %v609_v42  ;;  %v602_v8 = vld [vmem:[#allocation7 + $0x38] sm:$0xff] }
 0x10f   :  { %v242_v38 = vmul.f32 0.0078125, %v226_v14  ;;  %v353_v41 = vmul.f32 %v1789_v10, %v1789_v10  ;;  %v289_v40 = vmul.f32 %v1786_v7, %v1786_v7  ;;  %1223 = vmatpush3.bf16.msra.mxu0 %v1220_v0  ;;  %v1224_v25 = vpack.c.bf16 %v602_v8, %v601_v51 }
 0x110   :  { %v205_v2 = vpop.xlane.xlu1 %204  ;;  %v157_v33 = vpop.xlane.xlu0 %156  ;;  %1209 = vmatprep.subr.bf16.mxu1 %v1208_v58 }
 0x111   :  { %v1798_v32 = vsub.f32 %v1629_v45, %v242_v38  ;;  %v1801_v39 = vsub.f32 %v1627_v44, %v242_v38  ;;  %v227_v1 = vadd.f32 %v205_v2, %v157_v33  ;;  %v389_v54 = vsel %vm118_vm0, %v353_v41, 0.0  ;;  %1225 = vmatprep.subr.bf16.mxu0 %v1224_v25  ;;  %1211 = vmatpush3.bf16.msra.mxu1 %v1208_v58 }
 0x112   :  { %387 = vadd.xlane.f32.xlu1 %v386_v30  ;;  %323 = vadd.xlane.f32.xlu0 %v322_v31  ;;  %v325_v55 = vsel %vm118_vm0, %v289_v40, 0.0 }
 0x113   :  { %v243_v62 = vmul.f32 0.0078125, %v227_v1  ;;  %v354_v45 = vmul.f32 %v1801_v39, %v1801_v39  ;;  %v290_v44 = vmul.f32 %v1798_v32, %v1798_v32  ;;  %1227 = vmatpush3.bf16.msra.mxu0 %v1224_v25 }
 0x114   :  { %v208_v3 = vpop.xlane.xlu1 %207  ;;  %v160_v37 = vpop.xlane.xlu0 %159 }
 0x115   :  { %v1810_v36 = vsub.f32 %v1637_v49, %v243_v62  ;;  %v1813_v4 = vsub.f32 %v1635_v48, %v243_v62  ;;  %v228_v6 = vadd.f32 %v208_v3, %v160_v37  ;;  %v392_v13 = vsel %vm118_vm0, %v354_v45, 0.0 }
 0x116   :  { %390 = vadd.xlane.f32.xlu1 %v389_v54  ;;  %326 = vadd.xlane.f32.xlu0 %v325_v55  ;;  %v328_v29 = vsel %vm118_vm0, %v290_v44, 0.0 }
 0x117   :  { %v244_v14 = vmul.f32 0.0078125, %v228_v6  ;;  %v355_v18 = vmul.f32 %v1813_v4, %v1813_v4  ;;  %v291_v49 = vmul.f32 %v1810_v36, %v1810_v36 }
 0x118   :  { %v211_v19 = vpop.xlane.xlu1 %210  ;;  %v163_v48 = vpop.xlane.xlu0 %162 }
 0x119   :  { %v1822_v30 = vsub.f32 %v1645_v53, %v244_v14  ;;  %v1825_v31 = vsub.f32 %v1643_v52, %v244_v14  ;;  %v229_v34 = vadd.f32 %v211_v19, %v163_v48  ;;  %v395_v17 = vsel %vm118_vm0, %v355_v18, 0.0 }
 0x11a   :  { %393 = vadd.xlane.f32.xlu1 %v392_v13  ;;  %329 = vadd.xlane.f32.xlu0 %v328_v29  ;;  %v331_v41 = vsel %vm118_vm0, %v291_v49, 0.0 }
 0x11b   :  { %v245_v38 = vmul.f32 0.0078125, %v229_v34  ;;  %v356_v40 = vmul.f32 %v1825_v31, %v1825_v31  ;;  %v292_v0 = vmul.f32 %v1822_v30, %v1822_v30 }
 0x11c   :  { %v214_v2 = vpop.xlane.xlu1 %213  ;;  %v166_v53 = vpop.xlane.xlu0 %165 }
 0x11d   :  { %v1834_v33 = vsub.f32 %v1653_v57, %v245_v38  ;;  %v1837_v52 = vsub.f32 %v1651_v56, %v245_v38  ;;  %v230_v1 = vadd.f32 %v214_v2, %v166_v53  ;;  %v398_v42 = vsel %vm118_vm0, %v356_v40, 0.0 }
 0x11e   :  { %396 = vadd.xlane.f32.xlu1 %v395_v17  ;;  %332 = vadd.xlane.f32.xlu0 %v331_v41  ;;  %v334_v51 = vsel %vm118_vm0, %v292_v0, 0.0 }
 0x11f   :  { %v246_v50 = vmul.f32 0.0078125, %v230_v1  ;;  %v357_v54 = vmul.f32 %v1837_v52, %v1837_v52  ;;  %v293_v55 = vmul.f32 %v1834_v33, %v1834_v33 }
 0x121   :  { %v1846_v57 = vsub.f32 %v1661_v61, %v246_v50  ;;  %v1849_v56 = vsub.f32 %v1659_v60, %v246_v50  ;;  %v401_v58 = vsel %vm118_vm0, %v357_v54, 0.0  ;;  %v337_v8 = vsel %vm118_vm0, %v293_v55, 0.0  ;;  %v1862_v54 = vld [vmem:[%s2041_s3] ss:$0 sm:$0xff] }
 0x122   :  { %399 = vadd.xlane.f32.xlu1 %v398_v42  ;;  %335 = vadd.xlane.f32.xlu0 %v334_v51  ;;  %v1867_v55 = vld [vmem:[%s2040_s2] ss:$0 sm:$0xff]  ;;  %s1412_s2 = smov [#allocation10]  }
 0x123   :  { %v358_v62 = vmul.f32 %v1849_v56, %v1849_v56  ;;  %v294_v45 = vmul.f32 %v1846_v57, %v1846_v57  ;;  %s1018_s3 = sshll.u32 %s1412_s2, 4  ;;  %s1019_s3 = int_to_ptr.vmem [resolvable:$true] %s1018_s3 }
 0x124   :  { %p1380_p11 = scmp.lt.s32.totalorder %s1019_s3, %s1019_s3 }
 0x125   :  { %v404_v61 = vsel %vm118_vm0, %v358_v62, 0.0  ;;  %v340_v44 = vsel %vm118_vm0, %v294_v45, 0.0  ;;  %v1874_v45 = vld [vmem:[%s2043_s5] ss:$0 sm:$0xff] }
 0x126   :  { %402 = vadd.xlane.f32.xlu1 %v401_v58  ;;  %338 = vadd.xlane.f32.xlu0 %v337_v8 }
 0x12a   :  { %405 = vadd.xlane.f32.xlu1 %v404_v61  ;;  %341 = vadd.xlane.f32.xlu0 %v340_v44  ;;  %v1879_v61 = vld [vmem:[%s2042_s4] ss:$0 sm:$0xff]  ;;  %s1375_s4 = scalar_lea.vmem %s1019_s3, 2048 }
 0x12b   :  { %p1376_p10 = scmp.ne.s32.totalorder %s1019_s3, %s1375_s4  ;;  %p1381_p12 = scmp.lt.s32.totalorder %s1375_s4, %s1375_s4 }
 0x12d   :  { %p1382_p13 = por %p1381_p12, %p1380_p11 }
 0x12f   :  { %p1383_p0 = pnand %p1382_p13, %p1376_p10 }
 0x17b   :  { %v361_v60 = vpop.xlane.xlu1 %360  ;;  %v297_v25 = vpop.xlane.xlu0 %296 }
 0x17c   :  { %v407_v3 = vadd.f32 %v361_v60, %v297_v25 }
 0x17e   :  { %v423_v37 = vmul.f32 0.0078125, %v407_v3 }
 0x17f   :  { %v364_v6 = vpop.xlane.xlu1 %363  ;;  %v300_v13 = vpop.xlane.xlu0 %299 }
 0x180   :  { %v439_v14 = vadd.f32 1e-05, %v423_v37  ;;  %v408_v29 = vadd.f32 %v364_v6, %v300_v13 }
 0x182   :  { %1252 = vrsqrt.f32 %v439_v14  ;;  %v424_v18 = vmul.f32 0.0078125, %v408_v29 }
 0x183   :  { %v367_v49 = vpop.xlane.xlu1 %366  ;;  %v303_v19 = vpop.xlane.xlu0 %302 }
 0x184   :  { %v440_v48 = vadd.f32 1e-05, %v424_v18  ;;  %v409_v34 = vadd.f32 %v367_v49, %v303_v19 }
 0x186   :  { %1254 = vrsqrt.f32 %v440_v48  ;;  %v425_v17 = vmul.f32 0.0078125, %v409_v34 }
 0x187   :  { %v370_v38 = vpop.xlane.xlu1 %369  ;;  %v306_v41 = vpop.xlane.xlu0 %305 }
 0x188   :  { %v441_v40 = vadd.f32 1e-05, %v425_v17  ;;  %v410_v0 = vadd.f32 %v370_v38, %v306_v41 }
 0x18a   :  { %1256 = vrsqrt.f32 %v441_v40  ;;  %v426_v2 = vmul.f32 0.0078125, %v410_v0 }
 0x18b   :  { %v373_v53 = vpop.xlane.xlu1 %372  ;;  %v309_v1 = vpop.xlane.xlu0 %308 }
 0x18c   :  { %v1253_v42 = vpop.eup %1252  ;;  %v442_v50 = vadd.f32 1e-05, %v426_v2  ;;  %v411_v51 = vadd.f32 %v373_v53, %v309_v1 }
 0x18d   :  { %v533_v58 = vmul.f32 %v1253_v42, %v1677_v27  ;;  %v471_v8 = vmul.f32 %v1253_v42, %v1674_v26 }
 0x18e   :  { %1258 = vrsqrt.f32 %v442_v50  ;;  %v427_v62 = vmul.f32 0.0078125, %v411_v51 }
 0x18f   :  { %v376_v44 = vpop.xlane.xlu1 %375  ;;  %v312_v60 = vpop.xlane.xlu0 %311  ;;  %v556_v25 = vmul.f32 %v1862_v54, %v533_v58  ;;  %v494_v27 = vmul.f32 %v1867_v55, %v471_v8 }
 0x190   :  { %v1255_v3 = vpop.eup %1254  ;;  %v443_v26 = vadd.f32 1e-05, %v427_v62  ;;  %v412_v37 = vadd.f32 %v376_v44, %v312_v60 }
 0x191   :  { %v579_v6 = vadd.f32 %v1874_v45, %v556_v25  ;;  %v517_v13 = vadd.f32 %v1879_v61, %v494_v27  ;;  %v534_v14 = vmul.f32 %v1255_v3, %v1671_v23  ;;  %v472_v29 = vmul.f32 %v1255_v3, %v1668_v22 }
 0x192   :  { %1260 = vrsqrt.f32 %v443_v26  ;;  %v428_v18 = vmul.f32 0.0078125, %v412_v37 }
 0x193   :  { %v379_v49 = vpop.xlane.xlu1 %378  ;;  %1132 = vmatprep.mubr.msk.f32.mxu1 %vm118_vm0, %v579_v6  ;;  %1172 = vmatprep.mubr.msk.f32.mxu0 %vm118_vm0, %v517_v13  ;;  %v315_v19 = vpop.xlane.xlu0 %314  ;;  %v557_v48 = vmul.f32 %v1862_v54, %v534_v14  ;;  %v495_v34 = vmul.f32 %v1867_v55, %v472_v29 }
 0x194   :  { %v1257_v17 = vpop.eup %1256  ;;  %v444_v38 = vadd.f32 1e-05, %v428_v18  ;;  %v413_v41 = vadd.f32 %v379_v49, %v315_v19 }
 0x195   :  { %v580_v40 = vadd.f32 %v1874_v45, %v557_v48  ;;  %v518_v23 = vadd.f32 %v1879_v61, %v495_v34  ;;  %v535_v22 = vmul.f32 %v1257_v17, %v1693_v46  ;;  %v473_v0 = vmul.f32 %v1257_v17, %v1690_v43 }
 0x196   :  { %1262 = vrsqrt.f32 %v444_v38  ;;  %v429_v2 = vmul.f32 0.0078125, %v413_v41 }
 0x197   :  { %v382_v53 = vpop.xlane.xlu1 %381  ;;  %1133 = vmatmul.mubr.msk.f32.vlgmr.msra.gmra.mrb[0].mxu1 %vm118_vm0, %v580_v40  ;;  %1173 = vmatmul.mubr.msk.f32.vlgmr.msra.gmra.mrb[0].mxu0 %vm118_vm0, %v518_v23  ;;  %v318_v1 = vpop.xlane.xlu0 %317  ;;  %v558_v42 = vmul.f32 %v1862_v54, %v535_v22  ;;  %v496_v50 = vmul.f32 %v1867_v55, %v473_v0 }
 0x198   :  { %v1259_v51 = vpop.eup %1258  ;;  %v445_v58 = vadd.f32 1e-05, %v429_v2  ;;  %v414_v8 = vadd.f32 %v382_v53, %v318_v1 }
 0x199   :  { %v581_v62 = vadd.f32 %v1874_v45, %v558_v42  ;;  %v519_v46 = vadd.f32 %v1879_v61, %v496_v50  ;;  %v536_v43 = vmul.f32 %v1259_v51, %v1704_v9  ;;  %v474_v44 = vmul.f32 %v1259_v51, %v1701_v59 }
 0x19a   :  { %1264 = vrsqrt.f32 %v445_v58  ;;  %v430_v60 = vmul.f32 0.0078125, %v414_v8 }
 0x19b   :  { %v385_v25 = vpop.xlane.xlu1 %384  ;;  %1135 = vmatprep.mubr.msk.f32.mxu1 %vm118_vm0, %v581_v62  ;;  %1175 = vmatprep.mubr.msk.f32.mxu0 %vm118_vm0, %v519_v46  ;;  %v321_v27 = vpop.xlane.xlu0 %320  ;;  %v559_v3 = vmul.f32 %v1862_v54, %v536_v43  ;;  %v497_v26 = vmul.f32 %v1867_v55, %v474_v44 }
 0x19c   :  { %v1261_v37 = vpop.eup %1260  ;;  %v446_v6 = vadd.f32 1e-05, %v430_v60  ;;  %v415_v13 = vadd.f32 %v385_v25, %v321_v27 }
 0x19d   :  { %v582_v14 = vadd.f32 %v1874_v45, %v559_v3  ;;  %v520_v9 = vadd.f32 %v1879_v61, %v497_v26  ;;  %v537_v59 = vmul.f32 %v1261_v37, %v1717_v11  ;;  %v475_v29 = vmul.f32 %v1261_v37, %v1714_v12 }
 0x19e   :  { %1266 = vrsqrt.f32 %v446_v6  ;;  %v431_v18 = vmul.f32 0.0078125, %v415_v13 }
 0x19f   :  { %v388_v49 = vpop.xlane.xlu1 %387  ;;  %1136 = vmatmul.mubr.msk.f32.gmra.mrb[2].mxu1 %vm118_vm0, %v582_v14  ;;  %1176 = vmatmul.mubr.msk.f32.gmra.mrb[2].mxu0 %vm118_vm0, %v520_v9  ;;  %v324_v19 = vpop.xlane.xlu0 %323  ;;  %v560_v48 = vmul.f32 %v1862_v54, %v537_v59  ;;  %v498_v34 = vmul.f32 %v1867_v55, %v475_v29 }
 0x1a0   :  { %v1263_v17 = vpop.eup %1262  ;;  %v447_v38 = vadd.f32 1e-05, %v431_v18  ;;  %v416_v41 = vadd.f32 %v388_v49, %v324_v19 }
 0x1a1   :  { %v583_v40 = vadd.f32 %v1874_v45, %v560_v48  ;;  %v521_v11 = vadd.f32 %v1879_v61, %v498_v34  ;;  %v538_v12 = vmul.f32 %v1263_v17, %v1729_v16  ;;  %v476_v23 = vmul.f32 %v1263_v17, %v1726_v35 }
 0x1a2   :  { %1268 = vrsqrt.f32 %v447_v38  ;;  %v432_v22 = vmul.f32 0.0078125, %v416_v41 }
 0x1a3   :  { %v391_v0 = vpop.xlane.xlu1 %390  ;;  %1138 = vmatprep.mubr.msk.f32.mxu1 %vm118_vm0, %v583_v40  ;;  %1178 = vmatprep.mubr.msk.f32.mxu0 %vm118_vm0, %v521_v11  ;;  %v327_v2 = vpop.xlane.xlu0 %326  ;;  %v561_v53 = vmul.f32 %v1862_v54, %v538_v12  ;;  %v499_v1 = vmul.f32 %v1867_v55, %v476_v23 }
 0x1a4   :  { %v1265_v42 = vpop.eup %1264  ;;  %v448_v50 = vadd.f32 1e-05, %v432_v22  ;;  %v417_v51 = vadd.f32 %v391_v0, %v327_v2 }
 0x1a5   :  { %v584_v58 = vadd.f32 %v1874_v45, %v561_v53  ;;  %v522_v16 = vadd.f32 %v1879_v61, %v499_v1  ;;  %v539_v35 = vmul.f32 %v1265_v42, %v1741_v20  ;;  %v477_v8 = vmul.f32 %v1265_v42, %v1738_v47 }
 0x1a6   :  { %1270 = vrsqrt.f32 %v448_v50  ;;  %v433_v62 = vmul.f32 0.0078125, %v417_v51 }
 0x1a7   :  { %v394_v46 = vpop.xlane.xlu1 %393  ;;  %1139 = vmatmul.mubr.msk.f32.gmra.mrb[4].mxu1 %vm118_vm0, %v584_v58  ;;  %1179 = vmatmul.mubr.msk.f32.gmra.mrb[4].mxu0 %vm118_vm0, %v522_v16  ;;  %v330_v43 = vpop.xlane.xlu0 %329  ;;  %v562_v44 = vmul.f32 %v1862_v54, %v539_v35  ;;  %v500_v60 = vmul.f32 %v1867_v55, %v477_v8 }
 0x1a8   :  { %v1267_v25 = vpop.eup %1266  ;;  %v449_v27 = vadd.f32 1e-05, %v433_v62  ;;  %v418_v3 = vadd.f32 %v394_v46, %v330_v43 }
 0x1a9   :  { %v585_v26 = vadd.f32 %v1874_v45, %v562_v44  ;;  %v523_v20 = vadd.f32 %v1879_v61, %v500_v60  ;;  %v540_v47 = vmul.f32 %v1267_v25, %v1753_v24  ;;  %v478_v37 = vmul.f32 %v1267_v25, %v1750_v63 }
 0x1aa   :  { %1272 = vrsqrt.f32 %v449_v27  ;;  %v434_v6 = vmul.f32 0.0078125, %v418_v3 }
 0x1ab   :  { %v397_v13 = vpop.xlane.xlu1 %396  ;;  %1141 = vmatprep.mubr.msk.f32.mxu1 %vm118_vm0, %v585_v26  ;;  %1181 = vmatprep.mubr.msk.f32.mxu0 %vm118_vm0, %v523_v20  ;;  %v333_v14 = vpop.xlane.xlu0 %332  ;;  %v563_v9 = vmul.f32 %v1862_v54, %v540_v47  ;;  %v501_v59 = vmul.f32 %v1867_v55, %v478_v37 }
 0x1ac   :  { %v1269_v29 = vpop.eup %1268  ;;  %v450_v18 = vadd.f32 1e-05, %v434_v6  ;;  %v419_v49 = vadd.f32 %v397_v13, %v333_v14 }
 0x1ad   :  { %v586_v19 = vadd.f32 %v1874_v45, %v563_v9  ;;  %v524_v24 = vadd.f32 %v1879_v61, %v501_v59  ;;  %v541_v63 = vmul.f32 %v1269_v29, %v1765_v28  ;;  %v479_v48 = vmul.f32 %v1269_v29, %v1762_v15 }
 0x1ae   :  { %1274 = vrsqrt.f32 %v450_v18  ;;  %v435_v34 = vmul.f32 0.0078125, %v419_v49 }
 0x1af   :  { %v400_v17 = vpop.xlane.xlu1 %399  ;;  %1142 = vmatmul.mubr.msk.f32.gmra.mrb[6].mxu1 %vm118_vm0, %v586_v19  ;;  %1182 = vmatmul.mubr.msk.f32.gmra.mrb[6].mxu0 %vm118_vm0, %v524_v24  ;;  %v336_v38 = vpop.xlane.xlu0 %335  ;;  %v564_v41 = vmul.f32 %v1862_v54, %v541_v63  ;;  %v502_v40 = vmul.f32 %v1867_v55, %v479_v48 }
 0x1b0   :  { %v1271_v11 = vpop.eup %1270  ;;  %v451_v12 = vadd.f32 1e-05, %v435_v34  ;;  %v420_v23 = vadd.f32 %v400_v17, %v336_v38 }
 0x1b1   :  { %v587_v22 = vadd.f32 %v1874_v45, %v564_v41  ;;  %v525_v28 = vadd.f32 %v1879_v61, %v502_v40  ;;  %v542_v15 = vmul.f32 %v1271_v11, %v1777_v21  ;;  %v480_v0 = vmul.f32 %v1271_v11, %v1774_v5 }
 0x1b2   :  { %1276 = vrsqrt.f32 %v451_v12  ;;  %v436_v2 = vmul.f32 0.0078125, %v420_v23 }
 0x1b3   :  { %v403_v53 = vpop.xlane.xlu1 %402  ;;  %1144 = vmatprep.mubr.msk.f32.mxu1 %vm118_vm0, %v587_v22  ;;  %1184 = vmatprep.mubr.msk.f32.mxu0 %vm118_vm0, %v525_v28  ;;  %v339_v1 = vpop.xlane.xlu0 %338  ;;  %v565_v42 = vmul.f32 %v1862_v54, %v542_v15  ;;  %v503_v50 = vmul.f32 %v1867_v55, %v480_v0 }
 0x1b4   :  { %v1273_v51 = vpop.eup %1272  ;;  %v452_v58 = vadd.f32 1e-05, %v436_v2  ;;  %v421_v16 = vadd.f32 %v403_v53, %v339_v1 }
 0x1b5   :  { %v588_v35 = vadd.f32 %v1874_v45, %v565_v42  ;;  %v526_v21 = vadd.f32 %v1879_v61, %v503_v50  ;;  %v543_v5 = vmul.f32 %v1273_v51, %v1789_v10  ;;  %v481_v8 = vmul.f32 %v1273_v51, %v1786_v7 }
 0x1b6   :  { %1278 = vrsqrt.f32 %v452_v58  ;;  %v437_v62 = vmul.f32 0.0078125, %v421_v16 }
 0x1b7   :  { %v406_v46 = vpop.xlane.xlu1 %405  ;;  %1145 = vmatmul.mubr.msk.f32.gmra.mrb[8].mxu1 %vm118_vm0, %v588_v35  ;;  %1185 = vmatmul.mubr.msk.f32.gmra.mrb[8].mxu0 %vm118_vm0, %v526_v21  ;;  %v342_v43 = vpop.xlane.xlu0 %341  ;;  %v566_v44 = vmul.f32 %v1862_v54, %v543_v5  ;;  %v504_v60 = vmul.f32 %v1867_v55, %v481_v8 }
 0x1b8   :  { %v1275_v25 = vpop.eup %1274  ;;  %v453_v27 = vadd.f32 1e-05, %v437_v62  ;;  %v422_v3 = vadd.f32 %v406_v46, %v342_v43 }
 0x1b9   :  { %v589_v26 = vadd.f32 %v1874_v45, %v566_v44  ;;  %v527_v10 = vadd.f32 %v1879_v61, %v504_v60  ;;  %v544_v7 = vmul.f32 %v1275_v25, %v1801_v39  ;;  %v482_v20 = vmul.f32 %v1275_v25, %v1798_v32 }
 0x1ba   :  { %1280 = vrsqrt.f32 %v453_v27  ;;  %v438_v47 = vmul.f32 0.0078125, %v422_v3 }
 0x1bb   :  { %1147 = vmatprep.mubr.msk.f32.mxu1 %vm118_vm0, %v589_v26  ;;  %1187 = vmatprep.mubr.msk.f32.mxu0 %vm118_vm0, %v527_v10  ;;  %v567_v37 = vmul.f32 %v1862_v54, %v544_v7  ;;  %v505_v6 = vmul.f32 %v1867_v55, %v482_v20 }
 0x1bc   :  { %v1277_v13 = vpop.eup %1276  ;;  %v454_v14 = vadd.f32 1e-05, %v438_v47 }
 0x1bd   :  { %v590_v9 = vadd.f32 %v1874_v45, %v567_v37  ;;  %v528_v59 = vadd.f32 %v1879_v61, %v505_v6  ;;  %v545_v39 = vmul.f32 %v1277_v13, %v1813_v4  ;;  %v483_v32 = vmul.f32 %v1277_v13, %v1810_v36 }
 0x1be   :  { %1282 = vrsqrt.f32 %v454_v14 }
 0x1bf   :  { %1148 = vmatmul.mubr.msk.f32.gmra.mrb[10].mxu1 %vm118_vm0, %v590_v9  ;;  %1188 = vmatmul.mubr.msk.f32.gmra.mrb[10].mxu0 %vm118_vm0, %v528_v59  ;;  %v568_v29 = vmul.f32 %v1862_v54, %v545_v39  ;;  %v506_v18 = vmul.f32 %v1867_v55, %v483_v32 }
 0x1c0   :  { %v1279_v49 = vpop.eup %1278 }
 0x1c1   :  { %v591_v19 = vadd.f32 %v1874_v45, %v568_v29  ;;  %v529_v24 = vadd.f32 %v1879_v61, %v506_v18  ;;  %v546_v63 = vmul.f32 %v1279_v49, %v1825_v31  ;;  %v484_v4 = vmul.f32 %v1279_v49, %v1822_v30 }
 0x1c3   :  { %1150 = vmatprep.mubr.msk.f32.mxu1 %vm118_vm0, %v591_v19  ;;  %1190 = vmatprep.mubr.msk.f32.mxu0 %vm118_vm0, %v529_v24  ;;  %v569_v36 = vmul.f32 %v1862_v54, %v546_v63  ;;  %v507_v48 = vmul.f32 %v1867_v55, %v484_v4 }
 0x1c4   :  { %v1281_v34 = vpop.eup %1280 }
 0x1c5   :  { %v592_v17 = vadd.f32 %v1874_v45, %v569_v36  ;;  %v530_v38 = vadd.f32 %v1879_v61, %v507_v48  ;;  %v547_v41 = vmul.f32 %v1281_v34, %v1837_v52  ;;  %v485_v40 = vmul.f32 %v1281_v34, %v1834_v33 }
 0x1c7   :  { %1151 = vmatmul.mubr.msk.f32.gmra.mrb[12].mxu1 %vm118_vm0, %v592_v17  ;;  %1191 = vmatmul.mubr.msk.f32.gmra.mrb[12].mxu0 %vm118_vm0, %v530_v38  ;;  %v570_v30 = vmul.f32 %v1862_v54, %v547_v41  ;;  %v508_v31 = vmul.f32 %v1867_v55, %v485_v40 }
 0x1c8   :  { %v1283_v11 = vpop.eup %1282 }
 0x1c9   :  { %v593_v12 = vadd.f32 %v1874_v45, %v570_v30  ;;  %v531_v23 = vadd.f32 %v1879_v61, %v508_v31  ;;  %v548_v22 = vmul.f32 %v1283_v11, %v1849_v56  ;;  %v486_v28 = vmul.f32 %v1283_v11, %v1846_v57 }
 0x1cb   :  { %1153 = vmatprep.mubr.msk.f32.mxu1 %vm118_vm0, %v593_v12  ;;  %1193 = vmatprep.mubr.msk.f32.mxu0 %vm118_vm0, %v531_v23  ;;  %v571_v33 = vmul.f32 %v1862_v54, %v548_v22  ;;  %v509_v52 = vmul.f32 %v1867_v55, %v486_v28 }
 0x1cd   :  { %v594_v15 = vadd.f32 %v1874_v45, %v571_v33  ;;  %v532_v0 = vadd.f32 %v1879_v61, %v509_v52 }
 0x1cf   :  { %1154 = vmatmul.mubr.msk.f32.gmra.mrb[14].mxu1 %vm118_vm0, %v594_v15  ;;  %1194 = vmatmul.mubr.msk.f32.gmra.mrb[14].mxu0 %vm118_vm0, %v532_v0 }
 0x26a   :  { %v1134_v2 = vpop.f32.mrb[0].mxu1  ;;  %v1174_v56 = vpop.f32.mrb[0].mxu0 }
 0x26b   :  { %v924_v53 = vadd.f32 %v1174_v56, %v1134_v2  ;;  %v725_v57 = vpop.f32.mrb[1].mxu1  ;;  %v918_v1 = vpop.f32.mrb[1].mxu0 }
 0x26c   :  { %v919_v42 = vadd.f32 %v918_v1, %v725_v57 }
 0x26d   :  { %998 = vst.msk [vmem:[#allocation10 + $0x8] sm:$0xff] %vm118_vm0, %v924_v53 }
 0x26e   :  { %997 = vst.msk [vmem:[#allocation10] sm:$0xff] %vm118_vm0, %v919_v42 }
 0x272   :  { %v1137_v54 = vpop.f32.mrb[2].mxu1  ;;  %v1177_v55 = vpop.f32.mrb[2].mxu0 }
 0x273   :  { %v934_v50 = vadd.f32 %v1177_v55, %v1137_v54  ;;  %v735_v45 = vpop.f32.mrb[3].mxu1  ;;  %v928_v51 = vpop.f32.mrb[3].mxu0 }
 0x274   :  { %v929_v61 = vadd.f32 %v928_v51, %v735_v45 }
 0x275   :  { %1000 = vst.msk [vmem:[#allocation10 + $0x18] sm:$0xff] %vm118_vm0, %v934_v50 }
 0x276   :  { %999 = vst.msk [vmem:[#allocation10 + $0x10] sm:$0xff] %vm118_vm0, %v929_v61 }
 0x27a   :  { %v1140_v58 = vpop.f32.mrb[4].mxu1  ;;  %v1180_v16 = vpop.f32.mrb[4].mxu0 }
 0x27b   :  { %v944_v35 = vadd.f32 %v1180_v16, %v1140_v58  ;;  %v745_v21 = vpop.f32.mrb[5].mxu1  ;;  %v938_v5 = vpop.f32.mrb[5].mxu0 }
 0x27c   :  { %v939_v8 = vadd.f32 %v938_v5, %v745_v21 }
 0x27d   :  { %1002 = vst.msk [vmem:[#allocation10 + $0x28] sm:$0xff] %vm118_vm0, %v944_v35 }
 0x27e   :  { %1001 = vst.msk [vmem:[#allocation10 + $0x20] sm:$0xff] %vm118_vm0, %v939_v8 }
 0x282   :  { %v1143_v62 = vpop.f32.mrb[6].mxu1  ;;  %v1183_v46 = vpop.f32.mrb[6].mxu0 }
 0x283   :  { %v954_v43 = vadd.f32 %v1183_v46, %v1143_v62  ;;  %v755_v44 = vpop.f32.mrb[7].mxu1  ;;  %v948_v60 = vpop.f32.mrb[7].mxu0 }
 0x284   :  { %v949_v25 = vadd.f32 %v948_v60, %v755_v44 }
 0x285   :  { %1004 = vst.msk [vmem:[#allocation10 + $0x38] sm:$0xff] %vm118_vm0, %v954_v43 }
 0x286   :  { %1003 = vst.msk [vmem:[#allocation10 + $0x30] sm:$0xff] %vm118_vm0, %v949_v25 }
 0x28a   :  { %v1146_v27 = vpop.f32.mrb[8].mxu1  ;;  %v1186_v3 = vpop.f32.mrb[8].mxu0 }
 0x28b   :  { %v964_v26 = vadd.f32 %v1186_v3, %v1146_v27  ;;  %v765_v10 = vpop.f32.mrb[9].mxu1  ;;  %v958_v7 = vpop.f32.mrb[9].mxu0 }
 0x28c   :  { %v959_v20 = vadd.f32 %v958_v7, %v765_v10 }
 0x28d   :  { %1006 = vst.msk [vmem:[#allocation10 + $0x48] sm:$0xff] %vm118_vm0, %v964_v26 }
 0x28e   :  { %1005 = vst.msk [vmem:[#allocation10 + $0x40] sm:$0xff] %vm118_vm0, %v959_v20 }
 0x292   :  { %v1149_v47 = vpop.f32.mrb[10].mxu1  ;;  %v1189_v37 = vpop.f32.mrb[10].mxu0 }
 0x293   :  { %v974_v6 = vadd.f32 %v1189_v37, %v1149_v47  ;;  %v775_v13 = vpop.f32.mrb[11].mxu1  ;;  %v968_v14 = vpop.f32.mrb[11].mxu0 }
 0x294   :  { %v969_v9 = vadd.f32 %v968_v14, %v775_v13 }
 0x295   :  { %1008 = vst.msk [vmem:[#allocation10 + $0x58] sm:$0xff] %vm118_vm0, %v974_v6 }
 0x296   :  { %1007 = vst.msk [vmem:[#allocation10 + $0x50] sm:$0xff] %vm118_vm0, %v969_v9 }
 0x29a   :  { %v1152_v59 = vpop.f32.mrb[12].mxu1  ;;  %v1192_v39 = vpop.f32.mrb[12].mxu0 }
 0x29b   :  { %v984_v32 = vadd.f32 %v1192_v39, %v1152_v59  ;;  %v785_v29 = vpop.f32.mrb[13].mxu1  ;;  %v978_v18 = vpop.f32.mrb[13].mxu0 }
 0x29c   :  { %v979_v49 = vadd.f32 %v978_v18, %v785_v29 }
 0x29d   :  { %1010 = vst.msk [vmem:[#allocation10 + $0x68] sm:$0xff] %vm118_vm0, %v984_v32 }
 0x29e   :  { %1009 = vst.msk [vmem:[#allocation10 + $0x60] sm:$0xff] %vm118_vm0, %v979_v49 }
 0x2a2   :  { %v1155_v19 = vpop.f32.mrb[14].mxu1  ;;  %v1195_v24 = vpop.f32.mrb[14].mxu0 }
 0x2a3   :  { %v994_v63 = vadd.f32 %v1195_v24, %v1155_v19  ;;  %v795_v4 = vpop.f32.mrb[15].mxu1  ;;  %v988_v36 = vpop.f32.mrb[15].mxu0 }
 0x2a4   :  { %v989_v48 = vadd.f32 %v988_v36, %v795_v4 }
 0x2a5   :  { %1012 = vst.msk [vmem:[#allocation10 + $0x78] sm:$0xff] %vm118_vm0, %v994_v63 }
 0x2a6   :  { %1011 = vst.msk [vmem:[#allocation10 + $0x70] sm:$0xff] %vm118_vm0, %v989_v48 }
 0x2a7   :  { %1386 = shalt.err (!%p1383_p0)
}
 0x2a8   :  { %s1387_s26 = scalar_lea.hbm %s2046_s8, 2048 }
 0x2a9   :  { %p1388_p1 = scmp.ne.s32.totalorder %s2046_s8, %s1387_s26  ;;  %p1391_p2 = scmp.lt.u32.totalorder %s1387_s26, %s2046_s8 }
 0x2ab   :  { %p1393_p3 = pnand %p1391_p2, %p1388_p1 }
 0x2ad   :  { %1396 = shalt.err (!%p1393_p3)
}
 0x2ae   :  { %1024 = dma.vmem_to_hbm [thread:$0]  %s1019_s3, 2048, %s2046_s8, [#allocation4], %s1408_s22, %s1408_s22, %s1409_s23  }
 0x2af   :  { %1403 = dma.done.wait [#allocation4], 2048  }
 0x2b0   :  { %1404 = vsyncadd [#allocation4], 4294965248 }
 0x2b1   :  { %1028 = vsyncpa [#allocation3], 1 }
 0x2b2   :  { %1029 = vsyncpa [#allocation6], 1 }
 0x2b3   :  { %1030 = vsyncpa [#allocation9], 1 }
 0x2b4   :  { %1031 = vsyncpa [#allocation4], 1 }

</bundles_post_ra>
